<compile_context>
chip_gen: v7x
topology: tpu7x:2x2x1
jax: 0.10.0
libtpu: 0.0.40
codegen_flags: <defaults>
</compile_context>

<pallas_src>
import math

import jax
import jax.numpy as jnp
from jax.experimental import pallas as pl
from jax.experimental.pallas import tpu as pltpu


# --------------------------------------------------------------------------
# Helpers
# --------------------------------------------------------------------------
def _round_up(x, m):
    return ((x + m - 1) // m) * m


def _cdiv(a, b):
    return (a + b - 1) // b


def _sublane(itemsize):
    # Sub-32-bit dtypes pack along sublanes: bf16 needs 16, int8/fp8 need 32.
    return {4: 8, 2: 16, 1: 32}.get(itemsize, 8)


def _vmem_capacity_bytes():
    try:
        return int(pltpu.get_tpu_info().vmem_capacity_bytes)
    except Exception:  # pragma: no cover - conservative fallback (v7x per-TC)
        return 64 * 1024 * 1024


def _balanced_tile(dim, target, align):
    """Largest aligned tile <= target that splits `dim` into equal-ish blocks
    (avoids nearly doubling padding when dim is slightly above the target)."""
    dim_a = _round_up(dim, align)
    if dim_a <= target:
        return dim_a
    steps = _cdiv(dim_a, target)
    return _round_up(_cdiv(dim_a, steps), align)


def _footprint(tm, tn, tk, itemsize, num_k):
    """Approximate VMEM footprint: double-buffered x/W/out tiles (+ f32 acc)."""
    fp = 2 * itemsize * (tm * tk + tk * tn + tm * tn)
    if num_k > 1:
        fp += 4 * tm * tn          # float32 accumulator scratch
    fp += 2 * itemsize * tn        # bias tile (negligible)
    return fp


# --------------------------------------------------------------------------
# Kernels
# --------------------------------------------------------------------------
def _linear_kernel_bias(x_ref, w_ref, b_ref, o_ref):
    # x: (tm, K), w: (K, tn), bias: (1, tn). Single pass over K, write once.
    acc = jnp.dot(x_ref[...], w_ref[...], preferred_element_type=jnp.float32)
    o_ref[...] = (acc + b_ref[...].astype(jnp.float32)).astype(o_ref.dtype)


def _linear_kernel_nobias(x_ref, w_ref, o_ref):
    o_ref[...] = jnp.dot(
        x_ref[...], w_ref[...], preferred_element_type=jnp.float32
    ).astype(o_ref.dtype)


def _linear_kernel_ksplit_bias(x_ref, w_ref, b_ref, o_ref, acc_ref):
    k = pl.program_id(2)

    @pl.when(k == 0)
    def _():
        # Fold the bias into the accumulator at k==0 (no extra finalize add).
        acc_ref[...] = jnp.broadcast_to(
            b_ref[...].astype(jnp.float32), acc_ref.shape)

    acc_ref[...] += jnp.dot(x_ref[...], w_ref[...],
                            preferred_element_type=jnp.float32)

    @pl.when(k == pl.num_programs(2) - 1)
    def _():
        o_ref[...] = acc_ref[...].astype(o_ref.dtype)


def _linear_kernel_ksplit_nobias(x_ref, w_ref, o_ref, acc_ref):
    k = pl.program_id(2)

    @pl.when(k == 0)
    def _():
        acc_ref[...] = jnp.zeros_like(acc_ref)

    acc_ref[...] += jnp.dot(x_ref[...], w_ref[...],
                            preferred_element_type=jnp.float32)

    @pl.when(k == pl.num_programs(2) - 1)
    def _():
        o_ref[...] = acc_ref[...].astype(o_ref.dtype)


# --------------------------------------------------------------------------
# Module wrapper
# --------------------------------------------------------------------------
class PallasLinear:
    """y = x @ W.T + b, W in PyTorch (d_out, d_in) layout.

    The weight is transposed/padded once at construction; per call only x is
    padded (cheap M/K edges) and a single pallas_call is issued.
    """

    def __init__(self, weight, bias=None, *, tm_target=512, tn_target=1024,
                 tk_target=2048):
        d_out, d_in = weight.shape
        self.d_in, self.d_out = d_in, d_out
        self.has_bias = bias is not None
        self.itemsize = jnp.dtype(weight.dtype).itemsize
        self.sublane = _sublane(self.itemsize)
        self.tm_target = int(tm_target)

        capacity = _vmem_capacity_bytes()
        # Stay well inside VMEM: v7x has only 64 MiB per TensorCore.
        self.budget = min(48 << 20, capacity // 2)

        # ---- Fix lane-dense N/K tiles at init (only tm depends on M). ----
        tn = _balanced_tile(d_out, int(tn_target), 128)
        tk = _balanced_tile(d_in, int(tk_target), 128)
        tm_assumed = min(self.tm_target, 512)
        while (max(tn, tk) > 128 and
               _footprint(tm_assumed, tn, tk, self.itemsize,
                          _cdiv(_round_up(d_in, tk), tk)) > self.budget):
            if tk >= tn:
                tk = max(128, _round_up(tk // 2, 128))
            else:
                tn = max(128, _round_up(tn // 2, 128))
        self.tn, self.tk = tn, tk
        self.k_pad = _round_up(d_in, tk)
        self.n_pad = _round_up(d_out, tn)
        self.num_k = self.k_pad // tk

        # ---- One-time weight transpose + pad: (d_in,d_out)->(k_pad,n_pad). ----
        w_t = jnp.asarray(weight).T
        self.w_prepped = jnp.pad(
            w_t, ((0, self.k_pad - d_in), (0, self.n_pad - d_out)))
        if self.has_bias:
            b2d = jnp.asarray(bias).reshape(1, d_out)
            self.b_prepped = jnp.pad(b2d, ((0, 0), (0, self.n_pad - d_out)))
        else:
            self.b_prepped = None

    def __call__(self, x):
        orig_shape = x.shape
        assert orig_shape[-1] == self.d_in, "last dim of x must equal d_in"
        x2d = x.reshape(-1, self.d_in)
        m = x2d.shape[0]

        # Per-call M tile: as large as the VMEM budget allows.
        tm = _balanced_tile(m, self.tm_target, self.sublane)
        while (tm > self.sublane and
               _footprint(tm, self.tn, self.tk, self.itemsize, self.num_k)
               > self.budget):
            tm = max(self.sublane, _round_up(tm // 2, self.sublane))
        m_pad = _round_up(m, tm)

        # Only x gets padded per call (K padding contributes 0 to the sum).
        if (m_pad, self.k_pad) != (m, self.d_in):
            x2d = jnp.pad(x2d, ((0, m_pad - m), (0, self.k_pad - self.d_in)))

        grid_m = m_pad // tm
        grid_n = self.n_pad // self.tn
        tn, tk = self.tn, self.tk

        footprint = _footprint(tm, tn, tk, self.itemsize, self.num_k)
        vmem_limit = int(min(_vmem_capacity_bytes(),
                             max(2 * footprint, 32 << 20)))

        flops = 2 * m_pad * self.k_pad * self.n_pad
        # Account for re-reads: x streamed once per N tile, W once per M tile.
        bytes_accessed = (x2d.size * x2d.dtype.itemsize * grid_n
                          + self.w_prepped.size * self.itemsize * grid_m
                          + m_pad * self.n_pad * jnp.dtype(x.dtype).itemsize)

        if self.num_k == 1:
            # K fits in one VMEM tile: 2-D grid, no accumulator scratch.
            grid = (grid_m, grid_n)
            dims = ("parallel", "parallel")
            x_spec = pl.BlockSpec((tm, tk), lambda i, j: (i, 0))
            w_spec = pl.BlockSpec((tk, tn), lambda i, j: (0, j))
            b_spec = pl.BlockSpec((1, tn), lambda i, j: (0, j))
            o_spec = pl.BlockSpec((tm, tn), lambda i, j: (i, j))
            scratch = []
            kernel = (_linear_kernel_bias if self.has_bias
                      else _linear_kernel_nobias)
        else:
            grid = (grid_m, grid_n, self.num_k)
            dims = ("parallel", "parallel", "arbitrary")
            x_spec = pl.BlockSpec((tm, tk), lambda i, j, k: (i, k))
            w_spec = pl.BlockSpec((tk, tn), lambda i, j, k: (k, j))
            b_spec = pl.BlockSpec((1, tn), lambda i, j, k: (0, j))
            o_spec = pl.BlockSpec((tm, tn), lambda i, j, k: (i, j))
            scratch = [pltpu.VMEM((tm, tn), jnp.float32)]
            kernel = (_linear_kernel_ksplit_bias if self.has_bias
                      else _linear_kernel_ksplit_nobias)

        in_specs = [x_spec, w_spec]
        args = [x2d, self.w_prepped]
        if self.has_bias:
            in_specs.append(b_spec)
            args.append(self.b_prepped)

        out2d = pl.pallas_call(
            kernel,
            out_shape=jax.ShapeDtypeStruct((m_pad, self.n_pad), x.dtype),
            grid_spec=pltpu.PrefetchScalarGridSpec(
                num_scalar_prefetch=0,
                grid=grid,
                in_specs=in_specs,
                out_specs=o_spec,
                scratch_shapes=scratch,
            ),
            compiler_params=pltpu.CompilerParams(
                dimension_semantics=dims,
                vmem_limit_bytes=vmem_limit),
            cost_estimate=pl.CostEstimate(
                flops=flops, transcendentals=0,
                bytes_accessed=bytes_accessed),
        )(*args)

        out2d = out2d[:m, :self.d_out]
        return out2d.reshape(*orig_shape[:-1], self.d_out)


def pallas_linear(x, weight, bias=None, **kwargs):
    """One-off convenience wrapper (weight prep is cached inside the class)."""
    return PallasLinear(weight, bias, **kwargs)(x)


def init_linear_params(key, d_in, d_out, dtype=jnp.float32, bias=True):
    """Deterministic init matching nn.Linear's default shapes/bounds:
    weight (d_out, d_in), bias (d_out,)."""
    kw, kb = jax.random.split(key)
    bound = 1.0 / math.sqrt(d_in)
    weight = jax.random.uniform(kw, (d_out, d_in), dtype,
                                minval=-bound, maxval=bound)
    b = (jax.random.uniform(kb, (d_out,), dtype, minval=-bound, maxval=bound)
         if bias else None)
    return weight, b
    # TODO(synk): orthogonal / xavier / kaiming initializer variants are
    # host-side parameter init, not part of the forward kernel.


if __name__ == "__main__":
    key = jax.random.PRNGKey(0)
    k_x, k_p = jax.random.split(key)

    # Small shapes consistent with the module: batch=2, seq=8, d_in=32, d_out=64
    batch, seq, d_in, d_out = 2, 8, 32, 64
    x = jax.random.normal(k_x, (batch, seq, d_in), dtype=jnp.float32)
    weight, bias = init_linear_params(k_p, d_in, d_out)

    lin = PallasLinear(weight, bias)
    y = lin(x)
    jax.block_until_ready(y)
    y_ref = x @ weight.T + bias
    assert y.shape == (batch, seq, d_out)
    assert jnp.allclose(y, y_ref, atol=1e-5, rtol=1e-5)

    # bias=False variant (dedicated kernel, no zero-vector DMA).
    lin_nb = PallasLinear(weight, None)
    y_nb = lin_nb(x)
    jax.block_until_ready(y_nb)
    assert jnp.allclose(y_nb, x @ weight.T, atol=1e-5, rtol=1e-5)

    # Larger, non-aligned shape: exercises M/K/N padding (single-K fast path).
    k_x2, k_p2 = jax.random.split(k_p)
    x2 = jax.random.normal(k_x2, (3, 37, 200), dtype=jnp.float32)
    w2, b2 = init_linear_params(k_p2, 200, 300)
    lin2 = PallasLinear(w2, b2)
    y2 = lin2(x2)
    jax.block_until_ready(y2)
    y2_ref = x2 @ w2.T + b2
    assert jnp.allclose(y2, y2_ref, atol=1e-4, rtol=1e-4)

    # Force the K-split (3-D grid + f32 accumulator) path with tiny tile targets.
    lin3 = PallasLinear(w2, b2, tm_target=64, tn_target=128, tk_target=128)
    y3 = lin3(x2)
    jax.block_until_ready(y3)
    assert jnp.allclose(y3, y2_ref, atol=1e-4, rtol=1e-4)

    print("KERNEL_OK")
</pallas_src>

<mosaic_0001>
module attributes {stable_mosaic.version = 11 : i64} {
  func.func @_linear_kernel_bias(%arg0: i32, %arg1: i32, %arg2: memref<16x128xf32, #tpu.memory_space<vmem>>, %arg3: memref<128x128xf32, #tpu.memory_space<vmem>>, %arg4: memref<1x128xf32, #tpu.memory_space<vmem>>, %arg5: memref<16x128xf32, #tpu.memory_space<vmem>>) attributes {dimension_semantics = [#tpu.dimension_semantics<parallel>, #tpu.dimension_semantics<parallel>], iteration_bounds = array<i64: 1, 1>, scalar_prefetch = 0 : i64, scratch_operands = 0 : i64, tpu.core_type = #tpu.core_type<tc>, window_params = [{transform_indices = @transform_0, window_bounds = array<i64: 16, 128>}, {transform_indices = @transform_1, window_bounds = array<i64: 128, 128>}, {transform_indices = @transform_2, window_bounds = array<i64: 1, 128>}, {transform_indices = @transform_3, window_bounds = array<i64: 16, 128>}]} {
    %c0 = arith.constant 0 : index
    %c0_0 = arith.constant 0 : index
    %0 = vector.load %arg2[%c0, %c0_0] : memref<16x128xf32, #tpu.memory_space<vmem>>, vector<16x128xf32>
    %c0_1 = arith.constant 0 : index
    %c0_2 = arith.constant 0 : index
    %1 = vector.load %arg3[%c0_1, %c0_2] : memref<128x128xf32, #tpu.memory_space<vmem>>, vector<128x128xf32>
    %cst = arith.constant dense<0.000000e+00> : vector<16x128xf32>
    %2 = tpu.matmul %0, %1, %cst {dimension_numbers = #tpu.dot_dimension_numbers<[1], [0], [0], [1], [0, 0, 1, 1], [], []>} : vector<16x128xf32>, vector<128x128xf32>, vector<16x128xf32> -> vector<16x128xf32>
    %c0_3 = arith.constant 0 : index
    %c0_4 = arith.constant 0 : index
    %3 = vector.load %arg4[%c0_3, %c0_4] : memref<1x128xf32, #tpu.memory_space<vmem>>, vector<1x128xf32>
    %4 = vector.broadcast %3 : vector<1x128xf32> to vector<16x128xf32>
    %5 = arith.addf %2, %4 : vector<16x128xf32>
    %c0_5 = arith.constant 0 : index
    %c0_6 = arith.constant 0 : index
    %6 = vector.load %arg5[%c0_5, %c0_6] : memref<16x128xf32, #tpu.memory_space<vmem>>, vector<16x128xf32>
    tpu.vector_store %arg5[%c0_5, %c0_6], %5 {strides = array<i32>} : memref<16x128xf32, #tpu.memory_space<vmem>>, vector<16x128xf32>,
    return
  }
  func.func @transform_0(%arg0: i32, %arg1: i32) -> (i32, i32) {
    %c0_i32 = arith.constant 0 : i32
    %c0_i32_0 = arith.constant 0 : i32
    return %arg0, %c0_i32 : i32, i32
  }
  func.func @transform_1(%arg0: i32, %arg1: i32) -> (i32, i32) {
    %c0_i32 = arith.constant 0 : i32
    %c0_i32_0 = arith.constant 0 : i32
    return %c0_i32, %arg1 : i32, i32
  }
  func.func @transform_2(%arg0: i32, %arg1: i32) -> (i32, i32) {
    %c0_i32 = arith.constant 0 : i32
    %c0_i32_0 = arith.constant 0 : i32
    return %c0_i32, %arg1 : i32, i32
  }
  func.func @transform_3(%arg0: i32, %arg1: i32) -> (i32, i32) {
    %c0_i32 = arith.constant 0 : i32
    return %arg0, %arg1 : i32, i32
  }
}

</mosaic_0001>

<bundles_post_ra>
// kernel: tpu_custom_call.1
= control target key start
LH: loop header
LB: loop body
LE: loop exit
PB: predicated region body
PF: predicated region fallthrough
CT: control target
= control target key end

     0   :  { %8 = vsyncpa [#allocation3], 0  ;;  %s399_s0 = inlined_call_operand.hbm [shape: f32[16,128], index: 0, kind: input, shape index: {}]   ;;  %s400_s1 = inlined_call_operand.hbm [shape: f32[128,128], index: 1, kind: input, shape index: {}]   ;;  %s401_s2 = inlined_call_operand.vmem [shape: f32[1,128], index: 2, kind: input, shape index: {}]   ;;  %s402_s3 = inlined_call_operand.hbm [shape: f32[16,128], index: 3, kind: output, shape index: {}]  }
   0x1   :  { %9 = vsyncpa [#allocation6], 0 }
   0x2   :  { %10 = vsyncpa [#allocation4], 0  ;;  %s326_s12 = smov [#allocation2]   ;;  %s254_s16 = scalar_lea.hbm %s399_s0, 256 }
   0x3   :  { %s16_s13 = sshll.u32 %s326_s12, 4  ;;  %p255_p0 = scmp.ne.s32.totalorder %s399_s0, %s254_s16  ;;  %s17_s13 = int_to_ptr.vmem [resolvable:$true] %s16_s13 }
   0x4   :  { %p258_p1 = scmp.lt.u32.totalorder %s254_s16, %s399_s0 }
   0x6   :  { %p260_p2 = pnand %p258_p1, %p255_p0 }
   0x8   :  { %263 = shalt.err (!%p260_p2)
}
   0x9   :  { %s264_s21 = scalar_lea.vmem %s17_s13, 256  ;;  %p269_p4 = scmp.lt.s32.totalorder %s17_s13, %s17_s13 }
   0xa   :  { %p265_p3 = scmp.ne.s32.totalorder %s17_s13, %s264_s21  ;;  %p270_p5 = scmp.lt.s32.totalorder %s264_s21, %s264_s21 }
   0xc   :  { %p271_p6 = por %p270_p5, %p269_p4 }
   0xe   :  { %p272_p7 = pnand %p271_p6, %p265_p3 }
  0x10   :  { %275 = shalt.err (!%p272_p7)
}
  0x11   :  { %s327_s22 = smov 128   ;;  %s328_s23 = smov 8  }
  0x12   :  { %22 = dma.hbm_to_vmem [thread:$0]  %s399_s0, 256, %s17_s13, [#allocation3], %s327_s22, %s327_s22, %s328_s23  }
  0x13   :  { %s329_s26 = smov [#allocation5]   ;;  %s276_s30 = scalar_lea.hbm %s400_s1, 2048 }
  0x14   :  { %s28_s27 = sshll.u32 %s329_s26, 4  ;;  %p277_p8 = scmp.ne.s32.totalorder %s400_s1, %s276_s30  ;;  %s29_s27 = int_to_ptr.vmem [resolvable:$true] %s28_s27 }
  0x15   :  { %p280_p9 = scmp.lt.u32.totalorder %s276_s30, %s400_s1 }
  0x17   :  { %p282_p10 = pnand %p280_p9, %p277_p8 }
  0x19   :  { %285 = shalt.err (!%p282_p10)
}
  0x1a   :  { %s286_s8 = scalar_lea.vmem %s29_s27, 2048  ;;  %p291_p12 = scmp.lt.s32.totalorder %s29_s27, %s29_s27 }
  0x1b   :  { %p287_p11 = scmp.ne.s32.totalorder %s29_s27, %s286_s8  ;;  %p292_p13 = scmp.lt.s32.totalorder %s286_s8, %s286_s8 }
  0x1d   :  { %p293_p0 = por %p292_p13, %p291_p12 }
  0x1f   :  { %p294_p1 = pnand %p293_p0, %p287_p11 }
  0x21   :  { %297 = shalt.err (!%p294_p1)
}
  0x22   :  { %34 = dma.hbm_to_vmem [thread:$0]  %s400_s1, 2048, %s29_s27, [#allocation6], %s327_s22, %s327_s22, %s328_s23  }
  0x23   :  { %320 = dma.done.wait [#allocation3], 256  }
  0x24   :  { %321 = vsyncadd [#allocation3], 4294967040 }
  0x25   :  { %322 = dma.done.wait [#allocation6], 2048  }
  0x26   :  { %323 = vsyncadd [#allocation6], 4294965248  ;;  %v45_v0 = vld [vmem:[#allocation5] sm:$0xff]  ;;  %v46_v1 = vld [vmem:[#allocation5 + $0x8] sm:$0xff]  ;;  %s330_s11 = smov [#allocation7]  }
  0x27   :  { %v47_v2 = vld [vmem:[#allocation5 + $0x10] sm:$0xff]  ;;  %v217_v3 = vpack.c.bf16 %v46_v1, %v45_v0  ;;  %v48_v4 = vld [vmem:[#allocation5 + $0x18] sm:$0xff]  ;;  %v49_v6 = vld [vmem:[#allocation5 + $0x20] sm:$0xff]  ;;  %s150_s12 = sshll.u32 %s330_s11, 4  ;;  %s151_s12 = int_to_ptr.vmem [resolvable:$true] %s150_s12 }
  0x28   :  { %v221_v5 = vpack.c.bf16 %v48_v4, %v47_v2  ;;  %v50_v7 = vld [vmem:[#allocation5 + $0x28] sm:$0xff]  ;;  %v43_v9 = vld [vmem:[#allocation2] sm:$0xff]  ;;  %v52_v11 = vld [vmem:[#allocation5 + $0x38] sm:$0xff]  ;;  %s298_s13 = scalar_lea.vmem %s151_s12, 256  ;;  %p303_p3 = scmp.lt.s32.totalorder %s151_s12, %s151_s12 }
  0x29   :  { %218 = vmatprep.subr.bf16.mxu0 %v217_v3  ;;  %v225_v8 = vpack.c.bf16 %v50_v7, %v49_v6  ;;  %v51_v10 = vld [vmem:[#allocation5 + $0x30] sm:$0xff]  ;;  %214 = vmatprep.mubr.f32.mxu0 %v43_v9  ;;  %v53_v13 = vld [vmem:[#allocation5 + $0x40] sm:$0xff]  ;;  %v54_v14 = vld [vmem:[#allocation5 + $0x48] sm:$0xff]  ;;  %p299_p2 = scmp.ne.s32.totalorder %s151_s12, %s298_s13  ;;  %p304_p4 = scmp.lt.s32.totalorder %s298_s13, %s298_s13 }
  0x2a   :  { %220 = vmatpush3.bf16.msra.mxu0 %v217_v3  ;;  %v229_v12 = vpack.c.bf16 %v52_v11, %v51_v10  ;;  %v233_v15 = vpack.c.bf16 %v54_v14, %v53_v13  ;;  %v55_v16 = vld [vmem:[#allocation5 + $0x50] sm:$0xff]  ;;  %v56_v17 = vld [vmem:[#allocation5 + $0x58] sm:$0xff]  ;;  %v57_v19 = vld [vmem:[#allocation5 + $0x60] sm:$0xff] }
  0x2b   :  { %222 = vmatprep.subr.bf16.mxu0 %v221_v5  ;;  %v237_v18 = vpack.c.bf16 %v56_v17, %v55_v16  ;;  %v58_v20 = vld [vmem:[#allocation5 + $0x68] sm:$0xff]  ;;  %v59_v22 = vld [vmem:[#allocation5 + $0x70] sm:$0xff]  ;;  %v60_v23 = vld [vmem:[#allocation5 + $0x78] sm:$0xff]  ;;  %p305_p5 = por %p304_p4, %p303_p3 }
  0x2c   :  { %v241_v21 = vpack.c.bf16 %v58_v20, %v57_v19  ;;  %v245_v24 = vpack.c.bf16 %v60_v23, %v59_v22  ;;  %v44_v25 = vld [vmem:[#allocation2 + $0x8] sm:$0xff]  ;;  %v163_v26 = vld [vmem:[%s401_s2] ss:$0 sm:$0xff] }
  0x2d   :  { %p306_p6 = pnand %p305_p5, %p299_p2 }
  0x2e   :  { %224 = vmatpush3.bf16.msra.mxu0 %v221_v5 }
  0x2f   :  { %226 = vmatprep.subr.bf16.mxu0 %v225_v8 }
  0x32   :  { %228 = vmatpush3.bf16.msra.mxu0 %v225_v8 }
  0x33   :  { %230 = vmatprep.subr.bf16.mxu0 %v229_v12 }
  0x36   :  { %232 = vmatpush3.bf16.msra.mxu0 %v229_v12 }
  0x37   :  { %234 = vmatprep.subr.bf16.mxu0 %v233_v15 }
  0x3a   :  { %236 = vmatpush3.bf16.msra.mxu0 %v233_v15 }
  0x3b   :  { %238 = vmatprep.subr.bf16.mxu0 %v237_v18 }
  0x3e   :  { %240 = vmatpush3.bf16.msra.mxu0 %v237_v18 }
  0x3f   :  { %242 = vmatprep.subr.bf16.mxu0 %v241_v21 }
  0x42   :  { %244 = vmatpush3.bf16.msra.mxu0 %v241_v21 }
  0x43   :  { %246 = vmatprep.subr.bf16.mxu0 %v245_v24 }
  0x46   :  { %248 = vmatpush3.bf16.msra.mxu0 %v245_v24 }
  0x49   :  { %215 = vmatmul.mubr.f32.vlgmr.msra.gmra.mrb[0].mxu0 %v44_v25 }
 0x11c   :  { %v216_v27 = vpop.f32.mrb[0].mxu0 }
 0x11d   :  { %v140_v28 = vadd.f32 %v216_v27, %v163_v26  ;;  %v134_v29 = vpop.f32.mrb[1].mxu0 }
 0x11e   :  { %v135_v30 = vadd.f32 %v163_v26, %v134_v29 }
 0x11f   :  { %144 = vst [vmem:[#allocation7 + $0x8] sm:$0xff] %v140_v28 }
 0x120   :  { %143 = vst [vmem:[#allocation7] sm:$0xff] %v135_v30 }
 0x121   :  { %309 = shalt.err (!%p306_p6)
}
 0x122   :  { %s310_s2 = scalar_lea.hbm %s402_s3, 256 }
 0x123   :  { %p311_p7 = scmp.ne.s32.totalorder %s402_s3, %s310_s2  ;;  %p314_p8 = scmp.lt.u32.totalorder %s310_s2, %s402_s3 }
 0x125   :  { %p316_p9 = pnand %p314_p8, %p311_p7 }
 0x127   :  { %319 = shalt.err (!%p316_p9)
}
 0x128   :  { %156 = dma.vmem_to_hbm [thread:$0]  %s151_s12, 256, %s402_s3, [#allocation4], %s327_s22, %s327_s22, %s328_s23  }
 0x129   :  { %324 = dma.done.wait [#allocation4], 256  }
 0x12a   :  { %325 = vsyncadd [#allocation4], 4294967040 }
 0x12b   :  { %160 = vsyncpa [#allocation3], 1 }
 0x12c   :  { %161 = vsyncpa [#allocation6], 1 }
 0x12d   :  { %162 = vsyncpa [#allocation4], 1 }

</bundles_post_ra>
